<compile_context>
chip_gen: v5e
topology: v5e:2x2
jax: 0.10.0
libtpu: 0.0.40
codegen_flags: <defaults>
</compile_context>

<pallas_src>
import jax
import jax.numpy as jnp
from jax.experimental import pallas as pl
from jax.experimental.pallas import tpu as pltpu

IN_F, HID_F, OUT_F = 10, 5, 3


def _round_up(n, m):
    return ((n + m - 1) // m) * m


def mlp_kernel(x_ref, p1_ref, p2_ref, o_ref):
    # x: (tb, 10); p1: (5, 11) = [W1 | b1]; p2: (3, 6) = [W2 | b2]; o: (3, tb)
    x = x_ref[...]
    w1 = p1_ref[:, :IN_F]             # (5, 10)
    b1 = p1_ref[:, IN_F:IN_F + 1]     # (5, 1)
    w2 = p2_ref[:, :HID_F]            # (3, 5)
    b2 = p2_ref[:, HID_F:HID_F + 1]   # (3, 1)

    # h^T = W1 @ x^T : contract the feature axes (NT-form dot, no data
    # transpose). Result (5, tb) keeps the batch on the 128-lane axis.
    hT = jax.lax.dot_general(
        w1, x, (((1,), (1,)), ((), ())), preferred_element_type=jnp.float32)
    hT = jnp.maximum(hT + b1, 0.0)    # bias + ReLU

    # y^T = W2 @ h^T : standard-form dot -> (3, tb), lane-dense store.
    yT = jax.lax.dot_general(
        w2, hT, (((1,), (0,)), ((), ())), preferred_element_type=jnp.float32)
    o_ref[...] = (yT + b2).astype(o_ref.dtype)


def model_with_separate_activation(x, w1, b1, w2, b2, *,
                                   block_rows=16384,
                                   target_grid_steps=4,
                                   min_pallas_rows=1024):
    """Forward of Linear(10,5) -> ReLU -> Linear(5,3).

    Weights are in PyTorch nn.Linear layout: w1 (5,10), b1 (5,), w2 (3,5), b2 (3,).
    Returns (B, 3) float32.
    """
    B = x.shape[0]

    # Small-batch fallback (perf review): for tiny batches the kernel launch /
    # DMA pipeline setup dwarfs the 2-row compute of the literal spec.
    if B < min_pallas_rows:
        return jnp.maximum(x @ w1.T + b1, 0.0) @ w2.T + b2

    # Batch tile selection:
    #  * B <= 512: one full-extent block (exempt from the (8,128) block rule).
    #  * else: multiple of 128 (output lane axis), sized so there are at least
    #    `target_grid_steps` grid steps (lets v7x shard the "parallel" axis
    #    across both TensorCores), capped by `block_rows` so the double-
    #    buffered working set (~1.1 KiB/row with the lane-padded x block) stays
    #    well under the 32 MiB scoped-VMEM cap on every generation.
    if B <= 512:
        tb = B
    else:
        tb = min(block_rows, _round_up(pl.cdiv(B, target_grid_steps), 128))
    grid = (pl.cdiv(B, tb),)

    # Pack each layer's weight and bias into one small slab -> fewer tiny
    # (8,128)-padded VMEM buffers / BlockSpecs (perf review, minor).
    p1 = jnp.concatenate([w1, b1.reshape(HID_F, 1)], axis=1)   # (5, 11)
    p2 = jnp.concatenate([w2, b2.reshape(OUT_F, 1)], axis=1)   # (3, 6)

    cost = pl.CostEstimate(
        flops=2 * B * (IN_F * HID_F + HID_F * OUT_F),
        transcendentals=0,
        bytes_accessed=4 * (B * (IN_F + OUT_F) + p1.size + p2.size),
    )

    yT = pl.pallas_call(
        mlp_kernel,
        out_shape=jax.ShapeDtypeStruct((OUT_F, B), jnp.float32),
        grid=grid,
        in_specs=[
            pl.BlockSpec((tb, IN_F), lambda i: (i, 0)),   # x rows, tiled over batch
            pl.BlockSpec(p1.shape, lambda i: (0, 0)),     # VMEM-resident params
            pl.BlockSpec(p2.shape, lambda i: (0, 0)),
        ],
        out_specs=pl.BlockSpec((OUT_F, tb), lambda i: (0, i)),  # lane-dense output
        compiler_params=pltpu.CompilerParams(
            dimension_semantics=("parallel",),            # megacore sharding on v7x
            vmem_limit_bytes=32 * 1024 * 1024,            # safe on v5e/v6e/v7x
        ),
        cost_estimate=cost,
    )(x, p1, p2)

    # (3, B) -> (B, 3): tiny transpose in the wrapper (12*B bytes each way).
    return yT.T


def init_params(key):
    """Deterministic synthetic parameters in PyTorch nn.Linear layout."""
    k1, k2, k3, k4 = jax.random.split(key, 4)
    w1 = jax.random.normal(k1, (HID_F, IN_F), jnp.float32) * 0.1   # Linear(10,5).weight
    b1 = jax.random.normal(k2, (HID_F,), jnp.float32) * 0.1
    w2 = jax.random.normal(k3, (OUT_F, HID_F), jnp.float32) * 0.1  # Linear(5,3).weight
    b2 = jax.random.normal(k4, (OUT_F,), jnp.float32) * 0.1
    return w1, b1, w2, b2


if __name__ == "__main__":
    key = jax.random.PRNGKey(0)
    k_x, k_p = jax.random.split(key)

    # Small shape matching the PyTorch spec: torch.randn(2, 10).
    x = jax.random.normal(k_x, (2, IN_F), jnp.float32)
    w1, b1, w2, b2 = init_params(k_p)
    ref = jnp.maximum(x @ w1.T + b1, 0.0) @ w2.T + b2

    # Force the Pallas path even at B=2 (fallback disabled) so the kernel runs.
    out = model_with_separate_activation(x, w1, b1, w2, b2, min_pallas_rows=0)
    out = jax.block_until_ready(out)
    assert out.shape == (2, OUT_F)
    assert jnp.allclose(out, ref, atol=1e-5, rtol=1e-5)

    # Tiled path: grid > 1 (>= 4 steps), partial last block, lane-dense stores.
    xb = jax.random.normal(k_x, (10000, IN_F), jnp.float32)
    out_b = jax.block_until_ready(model_with_separate_activation(xb, w1, b1, w2, b2))
    ref_b = jnp.maximum(xb @ w1.T + b1, 0.0) @ w2.T + b2
    assert out_b.shape == (10000, OUT_F)
    assert jnp.allclose(out_b, ref_b, atol=1e-4, rtol=1e-4)

    print("KERNEL_OK")
</pallas_src>

<mosaic_0001>
module attributes {stable_mosaic.version = 11 : i64} {
  func.func @mlp_kernel(%arg0: i32, %arg1: memref<2x10xf32, #tpu.memory_space<vmem>>, %arg2: memref<5x11xf32, #tpu.memory_space<vmem>>, %arg3: memref<3x6xf32, #tpu.memory_space<vmem>>, %arg4: memref<3x2xf32, #tpu.memory_space<vmem>>) attributes {dimension_semantics = [#tpu.dimension_semantics<parallel>], iteration_bounds = array<i64: 1>, scalar_prefetch = 0 : i64, scratch_operands = 0 : i64, tpu.core_type = #tpu.core_type<tc>, window_params = [{transform_indices = @transform_0, window_bounds = array<i64: 2, 10>}, {pipeline_mode = #tpu.pipeline_mode<synchronous>, transform_indices = @transform_1, window_bounds = array<i64: 5, 11>}, {pipeline_mode = #tpu.pipeline_mode<synchronous>, transform_indices = @transform_2, window_bounds = array<i64: 3, 6>}, {transform_indices = @transform_3, window_bounds = array<i64: 3, 2>}]} {
    %c0 = arith.constant 0 : index
    %c0_0 = arith.constant 0 : index
    %0 = vector.load %arg1[%c0, %c0_0] : memref<2x10xf32, #tpu.memory_space<vmem>>, vector<2x10xf32>
    %c0_1 = arith.constant 0 : index
    %c0_2 = arith.constant 0 : index
    %1 = vector.load %arg2[%c0_1, %c0_2] : memref<5x11xf32, #tpu.memory_space<vmem>>, vector<5x10xf32>
    %c0_3 = arith.constant 0 : index
    %c10 = arith.constant 10 : index
    %2 = vector.load %arg2[%c0_3, %c10] : memref<5x11xf32, #tpu.memory_space<vmem>>, vector<5x1xf32>
    %c0_4 = arith.constant 0 : index
    %c0_5 = arith.constant 0 : index
    %3 = vector.load %arg3[%c0_4, %c0_5] : memref<3x6xf32, #tpu.memory_space<vmem>>, vector<3x5xf32>
    %c0_6 = arith.constant 0 : index
    %c5 = arith.constant 5 : index
    %4 = vector.load %arg3[%c0_6, %c5] : memref<3x6xf32, #tpu.memory_space<vmem>>, vector<3x1xf32>
    %cst = arith.constant dense<0.000000e+00> : vector<5x2xf32>
    %5 = tpu.matmul %1, %0, %cst {dimension_numbers = #tpu.dot_dimension_numbers<[1], [1], [0], [0], [0, 0, 1, 0], [], []>} : vector<5x10xf32>, vector<2x10xf32>, vector<5x2xf32> -> vector<5x2xf32>
    %6 = vector.broadcast %2 : vector<5x1xf32> to vector<5x2xf32>
    %7 = arith.addf %5, %6 : vector<5x2xf32>
    %cst_7 = arith.constant 0.000000e+00 : f32
    %8 = vector.broadcast %cst_7 : f32 to vector<5x2xf32>
    %9 = arith.maximumf %7, %8 : vector<5x2xf32>
    %cst_8 = arith.constant dense<0.000000e+00> : vector<3x2xf32>
    %10 = tpu.matmul %3, %9, %cst_8 {dimension_numbers = #tpu.dot_dimension_numbers<[1], [0], [0], [1], [0, 0, 1, 1], [], []>} : vector<3x5xf32>, vector<5x2xf32>, vector<3x2xf32> -> vector<3x2xf32>
    %11 = vector.broadcast %4 : vector<3x1xf32> to vector<3x2xf32>
    %12 = arith.addf %10, %11 : vector<3x2xf32>
    %c0_9 = arith.constant 0 : index
    %c0_10 = arith.constant 0 : index
    %13 = vector.load %arg4[%c0_9, %c0_10] : memref<3x2xf32, #tpu.memory_space<vmem>>, vector<3x2xf32>
    tpu.vector_store %arg4[%c0_9, %c0_10], %12 {strides = array<i32>} : memref<3x2xf32, #tpu.memory_space<vmem>>, vector<3x2xf32>,
    return
  }
  func.func @transform_0(%arg0: i32) -> (i32, i32) {
    %c0_i32 = arith.constant 0 : i32
    %c0_i32_0 = arith.constant 0 : i32
    return %arg0, %c0_i32 : i32, i32
  }
  func.func @transform_1(%arg0: i32) -> (i32, i32) {
    %c0_i32 = arith.constant 0 : i32
    %c0_i32_0 = arith.constant 0 : i32
    %c0_i32_1 = arith.constant 0 : i32
    return %c0_i32, %c0_i32_0 : i32, i32
  }
  func.func @transform_2(%arg0: i32) -> (i32, i32) {
    %c0_i32 = arith.constant 0 : i32
    %c0_i32_0 = arith.constant 0 : i32
    %c0_i32_1 = arith.constant 0 : i32
    return %c0_i32, %c0_i32_0 : i32, i32
  }
  func.func @transform_3(%arg0: i32) -> (i32, i32) {
    %c0_i32 = arith.constant 0 : i32
    %c0_i32_0 = arith.constant 0 : i32
    return %c0_i32, %arg0 : i32, i32
  }
}

</mosaic_0001>

<bundles_post_ra>
// kernel: tpu_custom_call.1
= control target key start
LH: loop header
LB: loop body
LE: loop exit
PB: predicated region body
PF: predicated region fallthrough
CT: control target
= control target key end

     0   :  { %8 = vsyncpa [#allocation3], 0  ;;  %s254_s0 = inlined_call_operand.hbm [shape: f32[2,10], index: 0, kind: input, shape index: {}]   ;;  %s255_s1 = inlined_call_operand.hbm [shape: f32[5,11], index: 1, kind: input, shape index: {}]   ;;  %s256_s2 = inlined_call_operand.hbm [shape: f32[3,6], index: 2, kind: input, shape index: {}]   ;;  %s257_s3 = inlined_call_operand.vmem [shape: f32[3,2], index: 3, kind: output, shape index: {}]  }
   0x1   :  { %9 = vsyncpa [#allocation5], 0  ;;  %s26_s14 = sshll.u32 %s255_s1, 4  ;;  %s217_s15 = smov [#allocation4]   ;;  %s27_s14 = int_to_ptr.hbm [resolvable:$true] %s26_s14 }
   0x2   :  { %s28_s16 = sshll.u32 %s217_s15, 4  ;;  %s15_s19 = sshll.u32 %s254_s0, 4  ;;  %s29_s16 = int_to_ptr.vmem [resolvable:$true] %s28_s16  ;;  %s16_s19 = int_to_ptr.hbm [resolvable:$true] %s15_s19 }
   0x3   :  { %31 = dma.hbm_to_vmem [thread:$0]  %s27_s14, 128, %s29_s16, [#allocation5]  }
   0x4   :  { %s218_s20 = smov [#allocation2]   ;;  %s37_s24 = sshll.u32 %s256_s2, 4  ;;  %s38_s24 = int_to_ptr.hbm [resolvable:$true] %s37_s24 }
   0x5   :  { %s17_s21 = sshll.u32 %s218_s20, 4  ;;  %s219_s1 = smov [#allocation6]   ;;  %s18_s21 = int_to_ptr.vmem [resolvable:$true] %s17_s21 }
   0x6   :  { %20 = dma.hbm_to_vmem [thread:$0]  %s16_s19, 32, %s18_s21, [#allocation3]  }
   0x7   :  { %s39_s25 = sshll.u32 %s219_s1, 4  ;;  %s40_s25 = int_to_ptr.vmem [resolvable:$true] %s39_s25 }
   0x8   :  { %42 = dma.hbm_to_vmem [thread:$0]  %s38_s24, 64, %s40_s25, [#allocation5]  }
   0x9   :  { %213 = dma.done.wait [#allocation3], 32  }
   0xa   :  { %214 = vsyncadd [#allocation3], 4294967264 }
   0xb   :  { %215 = dma.done.wait [#allocation5], 192  }
   0xc   :  { %216 = vsyncadd [#allocation5], 4294967104  ;;  %v220_v0 = vmov 10   ;;  %vm63_vm0 = vcmask 80896   ;;  %v55_v1 = vld [vmem:[#allocation2] sm:$0x3] }
   0xd   :  { %139 = vset.pattern.permute.xlu0 %v220_v0  ;;  %v56_v2 = vld [vmem:[#allocation4] sm:$0x1f]  ;;  %130 = vmatpush.xpose.msk.msra.mxu0 %vm63_vm0, %v55_v1  ;;  %v57_v3 = vld [vmem:[#allocation6] sm:$0x7]  ;;  %v221_v4 = vmov 5   ;;  %vm98_vm1 = vcmask 1044480  }
   0xe   :  { %60 = vperm.xlu0 %139, %v56_v2   ;;  %vm95_vm2 = vcmask 39936   ;;  %vm122_vm3 = vcmask 10240  }
  0x10   :  { %131 = vmatmul.msk.f32.vlgmr.msra.gmra.mxu0 %vm63_vm0, %v56_v2 }
  0x16   :  { %140 = vset.pattern.permute.xlu0 %v221_v4 }
  0x17   :  { %92 = vperm.xlu0 %140, %v57_v3  }
  0x80   :  { %v61_v5 = vpop.permute.xlu0 %60 }
  0x89   :  { %v93_v9 = vpop.permute.xlu0 %92 }
  0x8d   :  { %v86_v6 = vpop.f32.mrf.mxu0 }
  0x8e   :  { %v87_v7 = vadd.f32 %v86_v6, %v61_v5 }
  0x90   :  { %v89_v8 = vmax.f32 %v87_v7, 0.0 }
  0x92   :  { %132 = vmatpush.msk.msra.mxu1 %vm98_vm1, %v89_v8 }
  0x93   :  { %133 = vmatmul.msk.f32.vlgmr.msra.gmra.mxu1 %vm95_vm2, %v57_v3 }
 0x110   :  { %v119_v10 = vpop.f32.mrf.mxu1 }
 0x111   :  { %v120_v11 = vadd.f32 %v119_v10, %v93_v9 }
 0x113   :  { %123 = vst.msk [vmem:[%s257_s3] sm:$0x7] %vm122_vm3, %v120_v11 }
 0x114   :  { %128 = vsyncpa [#allocation3], 1 }
 0x115   :  { %129 = vsyncpa [#allocation5], 1 }

</bundles_post_ra>
